<compile_context>
chip_gen: v6e
topology: v6e:2x2x1
jax: 0.10.0
libtpu: 0.0.40
codegen_flags: <defaults>
</compile_context>

<pallas_src>
import jax
import jax.numpy as jnp
from jax.experimental import pallas as pl
from jax.experimental.pallas import tpu as pltpu

BN_EPS = 1e-5
NEG_BIG = -1e30  # bias for padded class lanes -> exp() underflows to exactly 0


def _round_up(n, m):
    return ((n + m - 1) // m) * m


# ---------------------------------------------------------------------------
# Kernel: one batch tile per grid step; weights/biases resident in VMEM.
# ---------------------------------------------------------------------------
def net_ray_kernel(x_ref, w1_ref, b1_ref, w2_ref, b2_ref, w3_ref, b3_ref, o_ref):
    # fc1 + ReLU  (dropout is identity in eval mode); cast to MXU dtype in VMEM.
    x = x_ref[...].astype(w1_ref.dtype)
    h1 = jnp.dot(x, w1_ref[...], preferred_element_type=jnp.float32) + b1_ref[...]
    h1 = jnp.maximum(h1, 0.0)

    # fc2 with bn1 folded into the weights/bias, + ReLU
    h2 = jnp.dot(h1.astype(w2_ref.dtype), w2_ref[...],
                 preferred_element_type=jnp.float32) + b2_ref[...]
    h2 = jnp.maximum(h2, 0.0)

    # fc3 with bn2 folded in; padded class columns get a -1e30 bias
    logits = jnp.dot(h2.astype(w3_ref.dtype), w3_ref[...],
                     preferred_element_type=jnp.float32) + b3_ref[...]

    # log_softmax over the padded 128-wide class dim (padded lanes underflow to 0)
    zmax = jnp.max(logits, axis=1, keepdims=True)
    z = logits - zmax
    lse = jnp.log(jnp.sum(jnp.exp(z), axis=1, keepdims=True))
    logp = z - lse

    # Store only the narrow real-class slab (o_ref last dim == full array dim, so the
    # (8,128) rule is satisfied); cuts output HBM bytes 16x vs a (tb,128) f32 store.
    o_ref[...] = logp[:, : o_ref.shape[1]].astype(o_ref.dtype)


# ---------------------------------------------------------------------------
# Host-side parameter prep (call ONCE and cache the result):
# fold eval-mode BN into the next Linear, pad to lane multiples, cast MXU feeds.
# ---------------------------------------------------------------------------
def prepare_fused_params(params, *, lane=128, matmul_dtype=jnp.bfloat16):
    w1, b1 = params["w1"], params["b1"]          # (D, l1), (1, l1)
    w2, b2 = params["w2"], params["b2"]          # (l1, l2), (1, l2)
    w3, b3 = params["w3"], params["b3"]          # (l2, 2),  (1, 2)

    s1 = params["g1"] * jax.lax.rsqrt(params["v1"] + BN_EPS)   # (1, l1)
    t1 = params["be1"] - params["m1"] * s1
    s2 = params["g2"] * jax.lax.rsqrt(params["v2"] + BN_EPS)   # (1, l2)
    t2 = params["be2"] - params["m2"] * s2

    w2f = s1.reshape(-1, 1) * w2                 # diag(s1) @ W2
    b2f = b2 + t1 @ w2
    w3f = s2.reshape(-1, 1) * w3                 # diag(s2) @ W3
    b3f = b3 + t2 @ w3

    d, l1 = w1.shape
    l2 = w2f.shape[1]
    nc = w3f.shape[1]
    l1p, l2p, ncp = _round_up(l1, lane), _round_up(l2, lane), _round_up(nc, lane)
    out_lanes = min(ncp, _round_up(nc, 8))       # narrow output slab actually stored

    def pad2(a, rows, cols):
        return jnp.pad(a, ((0, rows - a.shape[0]), (0, cols - a.shape[1])))

    w1p = pad2(w1, d, l1p).astype(matmul_dtype)
    b1p = pad2(b1, 1, l1p).astype(jnp.float32)
    w2p = pad2(w2f, l1p, l2p).astype(matmul_dtype)
    b2p = pad2(b2f, 1, l2p).astype(jnp.float32)
    w3p = pad2(w3f, l2p, ncp).astype(matmul_dtype)
    b3p = jnp.concatenate(
        [b3f.astype(jnp.float32), jnp.full((1, ncp - nc), NEG_BIG, jnp.float32)], axis=1)
    return dict(w1=w1p, b1=b1p, w2=w2p, b2=b2p, w3=w3p, b3=b3p,
                num_classes=nc, out_lanes=out_lanes)


# ---------------------------------------------------------------------------
# Batch-tile selection: big tiles (amortize ~0.35us/step), but keep >=2 grid
# steps so v7x's two TensorCores both get work, and bound padding waste.
# ---------------------------------------------------------------------------
def _choose_tb(B, *, row_mult, max_tb=1024, min_steps=2):
    bp = _round_up(max(B, 1), row_mult)
    if bp <= row_mult * min_steps:
        return bp                                      # tiny batch: one tile
    n_steps = max(min_steps, pl.cdiv(bp, max_tb))
    return min(max_tb, _round_up(pl.cdiv(bp, n_steps), row_mult))


# ---------------------------------------------------------------------------
# Forward wrapper (takes the pre-folded params; no per-call weight prep)
# ---------------------------------------------------------------------------
def net_ray_forward_fused(x, fused, *, tb=None, max_tb=1024):
    """x: [B, 1, D] or [B, D]. fused: output of prepare_fused_params (cached).
    Returns log-probabilities [B, num_classes]."""
    if x.ndim == 3 and x.shape[1] == 1:
        x = jnp.squeeze(x, axis=1)   # axis-explicit: avoids the B==1 .squeeze() pitfall
    x = x.astype(jnp.float32)        # x stays f32 in HBM; MXU cast happens in-kernel
    B, D = x.shape

    w1, b1, w2, b2, w3, b3 = (fused[k] for k in ("w1", "b1", "w2", "b2", "w3", "b3"))
    nc, out_lanes = fused["num_classes"], fused["out_lanes"]
    ncp = w3.shape[1]
    assert D == w1.shape[0], (D, w1.shape)

    row_mult = 16 if w1.dtype == jnp.bfloat16 else 8
    if tb is None:
        tb = _choose_tb(B, row_mult=row_mult, max_tb=max_tb)
    else:
        tb = _round_up(max(tb, row_mult), row_mult)
    bp = _round_up(B, tb)
    if bp != B:
        x = jnp.pad(x, ((0, bp - B), (0, 0)))   # only touch x again when padding is needed

    flops = 2 * bp * (D * w1.shape[1] + w1.shape[1] * w2.shape[1] + w2.shape[1] * ncp)
    bytes_accessed = int(
        bp * D * 4
        + sum(a.size * a.dtype.itemsize for a in (w1, b1, w2, b2, w3, b3))
        + bp * out_lanes * 4)

    weight_spec = lambda a: pl.BlockSpec(a.shape, lambda i: (0, 0),
                                         pipeline_mode=pl.Buffered(1))

    out = pl.pallas_call(
        net_ray_kernel,
        out_shape=jax.ShapeDtypeStruct((bp, out_lanes), jnp.float32),
        grid_spec=pltpu.PrefetchScalarGridSpec(
            num_scalar_prefetch=0,
            grid=(bp // tb,),
            in_specs=[
                pl.BlockSpec((tb, D), lambda i: (i, 0)),   # x tile (double-buffered)
                weight_spec(w1), weight_spec(b1),          # weights: VMEM-resident,
                weight_spec(w2), weight_spec(b2),          # single-buffered
                weight_spec(w3), weight_spec(b3),
            ],
            out_specs=pl.BlockSpec((tb, out_lanes), lambda i: (i, 0)),
        ),
        compiler_params=pltpu.CompilerParams(dimension_semantics=("parallel",)),
        cost_estimate=pl.CostEstimate(
            flops=flops, transcendentals=bp * (ncp + 1), bytes_accessed=bytes_accessed),
    )(x, w1, b1, w2, b2, w3, b3)

    return out[:B, :nc]


def net_ray_forward(x, params, **kwargs):
    """Convenience wrapper; prefer calling prepare_fused_params once and reusing it."""
    fused = prepare_fused_params(params)
    return net_ray_forward_fused(x, fused, **kwargs)


# ---------------------------------------------------------------------------
# Parameter init (PyTorch Linear / BatchNorm1d defaults) and pure-JAX reference
# ---------------------------------------------------------------------------
def init_params(key, inp_dimension, l1=200, l2=70):
    ks = jax.random.split(key, 6)

    def linear(kw, kb, fan_in, fan_out):
        bound = 1.0 / jnp.sqrt(float(fan_in))
        w = jax.random.uniform(kw, (fan_in, fan_out), jnp.float32, -bound, bound)
        b = jax.random.uniform(kb, (1, fan_out), jnp.float32, -bound, bound)
        return w, b

    w1, b1 = linear(ks[0], ks[1], inp_dimension, l1)
    w2, b2 = linear(ks[2], ks[3], l1, l2)
    w3, b3 = linear(ks[4], ks[5], l2, 2)

    def bn(n):
        return dict(g=jnp.ones((1, n), jnp.float32), be=jnp.zeros((1, n), jnp.float32),
                    m=jnp.zeros((1, n), jnp.float32), v=jnp.ones((1, n), jnp.float32))

    bn1, bn2 = bn(l1), bn(l2)
    return dict(
        w1=w1, b1=b1, g1=bn1["g"], be1=bn1["be"], m1=bn1["m"], v1=bn1["v"],
        w2=w2, b2=b2, g2=bn2["g"], be2=bn2["be"], m2=bn2["m"], v2=bn2["v"],
        w3=w3, b3=b3,
    )


def reference_forward(x, params):
    if x.ndim == 3 and x.shape[1] == 1:
        x = jnp.squeeze(x, axis=1)
    x = x.astype(jnp.float32)
    h1 = jnp.maximum(x @ params["w1"] + params["b1"], 0.0)
    h1 = (h1 - params["m1"]) / jnp.sqrt(params["v1"] + BN_EPS) * params["g1"] + params["be1"]
    h2 = jnp.maximum(h1 @ params["w2"] + params["b2"], 0.0)
    h2 = (h2 - params["m2"]) / jnp.sqrt(params["v2"] + BN_EPS) * params["g2"] + params["be2"]
    logits = h2 @ params["w3"] + params["b3"]
    return jax.nn.log_softmax(logits, axis=1)


if __name__ == "__main__":
    key = jax.random.PRNGKey(0)
    k_x, k_p, k_x2 = jax.random.split(key, 3)

    B, INP_DIM = 8, 32
    x = jax.random.normal(k_x, (B, 1, INP_DIM), jnp.float32)   # [B, 1, D]; squeezed in forward
    params = init_params(k_p, INP_DIM, l1=200, l2=70)
    ref = reference_forward(x, params)

    # Fold/pad/cast the weights ONCE; reuse across calls (per-call prep hoisted out).
    fused_f32 = prepare_fused_params(params, matmul_dtype=jnp.float32)
    fused_bf16 = prepare_fused_params(params)                   # bf16 MXU feeds (default)

    # f32-fed MXU path (faithful to eval-mode PyTorch forward), single-tile grid
    out = jax.block_until_ready(net_ray_forward_fused(x, fused_f32))
    assert out.shape == (B, 2), out.shape
    assert jnp.allclose(out, ref, atol=1e-4, rtol=1e-4), float(jnp.max(jnp.abs(out - ref)))
    assert jnp.allclose(jnp.sum(jnp.exp(out), axis=1), 1.0, atol=1e-5)

    # multi-tile grid path (>=2 grid steps; exercises v7x dual-TC sharding + batch padding)
    B2 = 48
    x2 = jax.random.normal(k_x2, (B2, INP_DIM), jnp.float32)    # [B, D] also accepted
    ref2 = reference_forward(x2, params)
    out2 = jax.block_until_ready(net_ray_forward_fused(x2, fused_f32))
    assert out2.shape == (B2, 2), out2.shape
    assert jnp.allclose(out2, ref2, atol=1e-4, rtol=1e-4), float(jnp.max(jnp.abs(out2 - ref2)))

    # bf16-fed MXU path (default: halves weight/x-tile DMA bytes; f32 accumulation/softmax)
    out_bf16 = jax.block_until_ready(net_ray_forward_fused(x, fused_bf16))
    assert out_bf16.shape == (B, 2)
    assert jnp.allclose(jnp.sum(jnp.exp(out_bf16), axis=1), 1.0, atol=1e-2)
    assert jnp.allclose(out_bf16, ref, atol=0.15, rtol=0.1)

    print("KERNEL_OK")
</pallas_src>

<mosaic_0001>
module attributes {stable_mosaic.version = 11 : i64} {
  func.func @net_ray_kernel(%arg0: i32, %arg1: memref<8x32xf32, #tpu.memory_space<vmem>>, %arg2: memref<32x256xf32, #tpu.memory_space<vmem>>, %arg3: memref<1x256xf32, #tpu.memory_space<vmem>>, %arg4: memref<256x128xf32, #tpu.memory_space<vmem>>, %arg5: memref<1x128xf32, #tpu.memory_space<vmem>>, %arg6: memref<128x128xf32, #tpu.memory_space<vmem>>, %arg7: memref<1x128xf32, #tpu.memory_space<vmem>>, %arg8: memref<8x8xf32, #tpu.memory_space<vmem>>) attributes {dimension_semantics = [#tpu.dimension_semantics<parallel>], iteration_bounds = array<i64: 1>, scalar_prefetch = 0 : i64, scratch_operands = 0 : i64, tpu.core_type = #tpu.core_type<tc>, window_params = [{transform_indices = @transform_0, window_bounds = array<i64: 8, 32>}, {pipeline_mode = #tpu.pipeline_mode<synchronous>, transform_indices = @transform_1, window_bounds = array<i64: 32, 256>}, {pipeline_mode = #tpu.pipeline_mode<synchronous>, transform_indices = @transform_2, window_bounds = array<i64: 1, 256>}, {pipeline_mode = #tpu.pipeline_mode<synchronous>, transform_indices = @transform_3, window_bounds = array<i64: 256, 128>}, {pipeline_mode = #tpu.pipeline_mode<synchronous>, transform_indices = @transform_4, window_bounds = array<i64: 1, 128>}, {pipeline_mode = #tpu.pipeline_mode<synchronous>, transform_indices = @transform_5, window_bounds = array<i64: 128, 128>}, {pipeline_mode = #tpu.pipeline_mode<synchronous>, transform_indices = @transform_6, window_bounds = array<i64: 1, 128>}, {transform_indices = @transform_7, window_bounds = array<i64: 8, 8>}]} {
    %c0 = arith.constant 0 : index
    %c0_0 = arith.constant 0 : index
    %0 = vector.load %arg1[%c0, %c0_0] : memref<8x32xf32, #tpu.memory_space<vmem>>, vector<8x32xf32>
    %c0_1 = arith.constant 0 : index
    %c0_2 = arith.constant 0 : index
    %1 = vector.load %arg2[%c0_1, %c0_2] : memref<32x256xf32, #tpu.memory_space<vmem>>, vector<32x256xf32>
    %cst = arith.constant dense<0.000000e+00> : vector<8x256xf32>
    %2 = tpu.matmul %0, %1, %cst {dimension_numbers = #tpu.dot_dimension_numbers<[1], [0], [0], [1], [0, 0, 1, 1], [], []>} : vector<8x32xf32>, vector<32x256xf32>, vector<8x256xf32> -> vector<8x256xf32>
    %c0_3 = arith.constant 0 : index
    %c0_4 = arith.constant 0 : index
    %3 = vector.load %arg3[%c0_3, %c0_4] : memref<1x256xf32, #tpu.memory_space<vmem>>, vector<1x256xf32>
    %4 = vector.broadcast %3 : vector<1x256xf32> to vector<8x256xf32>
    %5 = arith.addf %2, %4 : vector<8x256xf32>
    %cst_5 = arith.constant 0.000000e+00 : f32
    %6 = vector.broadcast %cst_5 : f32 to vector<8x256xf32>
    %7 = arith.maximumf %5, %6 : vector<8x256xf32>
    %c0_6 = arith.constant 0 : index
    %c0_7 = arith.constant 0 : index
    %8 = vector.load %arg4[%c0_6, %c0_7] : memref<256x128xf32, #tpu.memory_space<vmem>>, vector<256x128xf32>
    %cst_8 = arith.constant dense<0.000000e+00> : vector<8x128xf32>
    %9 = tpu.matmul %7, %8, %cst_8 {dimension_numbers = #tpu.dot_dimension_numbers<[1], [0], [0], [1], [0, 0, 1, 1], [], []>} : vector<8x256xf32>, vector<256x128xf32>, vector<8x128xf32> -> vector<8x128xf32>
    %c0_9 = arith.constant 0 : index
    %c0_10 = arith.constant 0 : index
    %10 = vector.load %arg5[%c0_9, %c0_10] : memref<1x128xf32, #tpu.memory_space<vmem>>, vector<1x128xf32>
    %11 = vector.broadcast %10 : vector<1x128xf32> to vector<8x128xf32>
    %12 = arith.addf %9, %11 : vector<8x128xf32>
    %cst_11 = arith.constant 0.000000e+00 : f32
    %13 = vector.broadcast %cst_11 : f32 to vector<8x128xf32>
    %14 = arith.maximumf %12, %13 : vector<8x128xf32>
    %c0_12 = arith.constant 0 : index
    %c0_13 = arith.constant 0 : index
    %15 = vector.load %arg6[%c0_12, %c0_13] : memref<128x128xf32, #tpu.memory_space<vmem>>, vector<128x128xf32>
    %cst_14 = arith.constant dense<0.000000e+00> : vector<8x128xf32>
    %16 = tpu.matmul %14, %15, %cst_14 {dimension_numbers = #tpu.dot_dimension_numbers<[1], [0], [0], [1], [0, 0, 1, 1], [], []>} : vector<8x128xf32>, vector<128x128xf32>, vector<8x128xf32> -> vector<8x128xf32>
    %c0_15 = arith.constant 0 : index
    %c0_16 = arith.constant 0 : index
    %17 = vector.load %arg7[%c0_15, %c0_16] : memref<1x128xf32, #tpu.memory_space<vmem>>, vector<1x128xf32>
    %18 = vector.broadcast %17 : vector<1x128xf32> to vector<8x128xf32>
    %19 = arith.addf %16, %18 : vector<8x128xf32>
    %cst_17 = arith.constant dense<0xFF800000> : vector<8xf32>
    %20 = vector.multi_reduction <maximumf>, %19, %cst_17 [1] : vector<8x128xf32> to vector<8xf32>
    %21 = vector.shape_cast %20 : vector<8xf32> to vector<8x1xf32>
    %22 = vector.broadcast %21 : vector<8x1xf32> to vector<8x128xf32>
    %23 = arith.subf %19, %22 : vector<8x128xf32>
    %24 = math.exp %23 : vector<8x128xf32>
    %cst_18 = arith.constant dense<0.000000e+00> : vector<8xf32>
    %25 = vector.multi_reduction <add>, %24, %cst_18 [1] : vector<8x128xf32> to vector<8xf32>
    %26 = vector.shape_cast %25 : vector<8xf32> to vector<8x1xf32>
    %27 = math.log %26 : vector<8x1xf32>
    %28 = vector.broadcast %27 : vector<8x1xf32> to vector<8x128xf32>
    %29 = arith.subf %23, %28 : vector<8x128xf32>
    %30 = vector.extract_strided_slice %29 {offsets = [0, 0], sizes = [8, 8], strides = [1, 1]} : vector<8x128xf32> to vector<8x8xf32>
    %c0_19 = arith.constant 0 : index
    %c0_20 = arith.constant 0 : index
    %31 = vector.load %arg8[%c0_19, %c0_20] : memref<8x8xf32, #tpu.memory_space<vmem>>, vector<8x8xf32>
    tpu.vector_store %arg8[%c0_19, %c0_20], %30 {strides = array<i32>} : memref<8x8xf32, #tpu.memory_space<vmem>>, vector<8x8xf32>,
    return
  }
  func.func @transform_0(%arg0: i32) -> (i32, i32) {
    %c0_i32 = arith.constant 0 : i32
    %c0_i32_0 = arith.constant 0 : i32
    return %arg0, %c0_i32 : i32, i32
  }
  func.func @transform_1(%arg0: i32) -> (i32, i32) {
    %c0_i32 = arith.constant 0 : i32
    %c0_i32_0 = arith.constant 0 : i32
    %c0_i32_1 = arith.constant 0 : i32
    return %c0_i32, %c0_i32_0 : i32, i32
  }
  func.func @transform_2(%arg0: i32) -> (i32, i32) {
    %c0_i32 = arith.constant 0 : i32
    %c0_i32_0 = arith.constant 0 : i32
    %c0_i32_1 = arith.constant 0 : i32
    return %c0_i32, %c0_i32_0 : i32, i32
  }
  func.func @transform_3(%arg0: i32) -> (i32, i32) {
    %c0_i32 = arith.constant 0 : i32
    %c0_i32_0 = arith.constant 0 : i32
    %c0_i32_1 = arith.constant 0 : i32
    return %c0_i32, %c0_i32_0 : i32, i32
  }
  func.func @transform_4(%arg0: i32) -> (i32, i32) {
    %c0_i32 = arith.constant 0 : i32
    %c0_i32_0 = arith.constant 0 : i32
    %c0_i32_1 = arith.constant 0 : i32
    return %c0_i32, %c0_i32_0 : i32, i32
  }
  func.func @transform_5(%arg0: i32) -> (i32, i32) {
    %c0_i32 = arith.constant 0 : i32
    %c0_i32_0 = arith.constant 0 : i32
    %c0_i32_1 = arith.constant 0 : i32
    return %c0_i32, %c0_i32_0 : i32, i32
  }
  func.func @transform_6(%arg0: i32) -> (i32, i32) {
    %c0_i32 = arith.constant 0 : i32
    %c0_i32_0 = arith.constant 0 : i32
    %c0_i32_1 = arith.constant 0 : i32
    return %c0_i32, %c0_i32_0 : i32, i32
  }
  func.func @transform_7(%arg0: i32) -> (i32, i32) {
    %c0_i32 = arith.constant 0 : i32
    %c0_i32_0 = arith.constant 0 : i32
    return %arg0, %c0_i32 : i32, i32
  }
}

</mosaic_0001>

<bundles_post_ra>
// kernel: tpu_custom_call.1
= control target key start
LH: loop header
LB: loop body
LE: loop exit
PB: predicated region body
PF: predicated region fallthrough
CT: control target
= control target key end

     0   :  { %12 = vsyncpa [#allocation3], 0  ;;  %s716_s0 = inlined_call_operand.hbm [shape: f32[8,32], index: 0, kind: input, shape index: {}]   ;;  %s717_s1 = inlined_call_operand.hbm [shape: f32[32,256], index: 1, kind: input, shape index: {}]   ;;  %s718_s2 = inlined_call_operand.vmem [shape: f32[1,256], index: 2, kind: input, shape index: {}]   ;;  %s719_s3 = inlined_call_operand.hbm [shape: f32[256,128], index: 3, kind: input, shape index: {}]   ;;  %s720_s4 = inlined_call_operand.vmem [shape: f32[1,128], index: 4, kind: input, shape index: {}]   ;;  %s721_s5 = inlined_call_operand.hbm [shape: f32[128,128], index: 5, kind: input, shape index: {}]   ;;  %s722_s6 = inlined_call_operand.vmem [shape: f32[1,128], index: 6, kind: input, shape index: {}]   ;;  %s723_s7 = inlined_call_operand.hbm [shape: f32[8,8], index: 7, kind: output, shape index: {}]  }
   0x1   :  { %13 = vsyncpa [#allocation6], 0 }
   0x2   :  { %14 = vsyncpa [#allocation9], 0 }
   0x3   :  { %15 = vsyncpa [#allocation4], 0  ;;  %s623_s24 = smov [#allocation5]  }
   0x4   :  { %s31_s25 = sshll.u32 %s623_s24, 4  ;;  %s32_s25 = int_to_ptr.vmem [resolvable:$true] %s31_s25 }
   0x5   :  { %s523_s26 = scalar_lea.vmem %s32_s25, 1024  ;;  %p528_p1 = scmp.lt.s32.totalorder %s32_s25, %s32_s25 }
   0x6   :  { %p524_p0 = scmp.ne.s32.totalorder %s32_s25, %s523_s26  ;;  %p529_p2 = scmp.lt.s32.totalorder %s523_s26, %s523_s26 }
   0x8   :  { %p530_p3 = por %p529_p2, %p528_p1 }
   0xa   :  { %p531_p4 = pnand %p530_p3, %p524_p0 }
   0xc   :  { %534 = shalt.err (!%p531_p4)
}
   0xd   :  { %s624_s27 = smov 256   ;;  %s625_s28 = smov 16  }
   0xe   :  { %37 = dma.hbm_to_vmem [thread:$0]  %s717_s1, 1024, %s32_s25, [#allocation6], %s624_s27, %s624_s27, %s625_s28  }
   0xf   :  { %s626_s8 = smov [#allocation2]   ;;  %s627_s10 = smov [#allocation7]  }
  0x10   :  { %s22_s9 = sshll.u32 %s626_s8, 4  ;;  %s45_s11 = sshll.u32 %s627_s10, 4  ;;  %s23_s9 = int_to_ptr.vmem [resolvable:$true] %s22_s9  ;;  %s46_s11 = int_to_ptr.vmem [resolvable:$true] %s45_s11 }
  0x11   :  { %s543_s12 = scalar_lea.vmem %s23_s9, 128  ;;  %p548_p6 = scmp.lt.s32.totalorder %s23_s9, %s23_s9 }
  0x12   :  { %p544_p5 = scmp.ne.s32.totalorder %s23_s9, %s543_s12  ;;  %p549_p7 = scmp.lt.s32.totalorder %s543_s12, %s543_s12 }
  0x14   :  { %p550_p8 = por %p549_p7, %p548_p6 }
  0x16   :  { %p551_p9 = pnand %p550_p8, %p544_p5 }
  0x18   :  { %554 = shalt.err (!%p551_p9)
}
  0x19   :  { %25 = dma.hbm_to_vmem [thread:$0]  %s716_s0, 128, %s23_s9, [#allocation3]  }
  0x1a   :  { %s563_s15 = scalar_lea.vmem %s46_s11, 4096  ;;  %p568_p11 = scmp.lt.s32.totalorder %s46_s11, %s46_s11 }
  0x1b   :  { %p564_p10 = scmp.ne.s32.totalorder %s46_s11, %s563_s15  ;;  %p569_p12 = scmp.lt.s32.totalorder %s563_s15, %s563_s15 }
  0x1d   :  { %p570_p13 = por %p569_p12, %p568_p11 }
  0x1f   :  { %p571_p0 = pnand %p570_p13, %p564_p10 }
  0x21   :  { %574 = shalt.err (!%p571_p0)
}
  0x22   :  { %s628_s1 = smov 128   ;;  %s629_s16 = smov 8  }
  0x23   :  { %51 = dma.hbm_to_vmem [thread:$0]  %s719_s3, 4096, %s46_s11, [#allocation6], %s628_s1, %s628_s1, %s629_s16  }
  0x24   :  { %s630_s19 = smov [#allocation8]  }
  0x25   :  { %s59_s20 = sshll.u32 %s630_s19, 4  ;;  %s60_s20 = int_to_ptr.vmem [resolvable:$true] %s59_s20 }
  0x26   :  { %s583_s21 = scalar_lea.vmem %s60_s20, 2048  ;;  %p588_p2 = scmp.lt.s32.totalorder %s60_s20, %s60_s20 }
  0x27   :  { %p584_p1 = scmp.ne.s32.totalorder %s60_s20, %s583_s21  ;;  %p589_p3 = scmp.lt.s32.totalorder %s583_s21, %s583_s21 }
  0x29   :  { %p590_p4 = por %p589_p3, %p588_p2 }
  0x2b   :  { %p591_p5 = pnand %p590_p4, %p584_p1 }
  0x2d   :  { %594 = shalt.err (!%p591_p5)
}
  0x2e   :  { %65 = dma.hbm_to_vmem [thread:$0]  %s721_s5, 2048, %s60_s20, [#allocation9], %s628_s1, %s628_s1, %s629_s16  }
  0x2f   :  { %615 = dma.done.wait [#allocation3], 128  }
  0x30   :  { %616 = vsyncadd [#allocation3], 4294967168 }
  0x31   :  { %617 = dma.done.wait [#allocation6], 5120  }
  0x32   :  { %618 = vsyncadd [#allocation6], 4294962176 }
  0x33   :  { %619 = dma.done.wait [#allocation9], 2048  }
  0x34   :  { %620 = vsyncadd [#allocation9], 4294965248  ;;  %v631_v0 = vmov 0.0   ;;  %v88_v1 = vld [vmem:[#allocation5 + $0x38] sm:$0xff]  ;;  %v87_v2 = vld [vmem:[#allocation5 + $0x30] sm:$0xff]  ;;  %vm101_vm0 = vcmask 261120   ;;  %v91_v53 = vlaneseq }
  0x35   :  { %169 = vmatprep.mubr.f32.mxu0 %v631_v0  ;;  %v86_v3 = vld [vmem:[#allocation5 + $0x28] sm:$0xff]  ;;  %129 = vmatprep.subr.mxu0 %v88_v1  ;;  %v85_v4 = vld [vmem:[#allocation5 + $0x20] sm:$0xff]  ;;  %v84_v5 = vld [vmem:[#allocation5 + $0x18] sm:$0xff]  ;;  %vm632_vm1 = vmmov 0   ;;  %vm391_vm2 = vcmask 64512  }
  0x36   :  { %130 = vmatpush1.msra.mxu0 %v87_v2  ;;  %v83_v6 = vld [vmem:[#allocation5 + $0x10] sm:$0xff]  ;;  %v209_v7 = vld [vmem:[#allocation7 + $0xf8] sm:$0xff]  ;;  %v82_v10 = vld [vmem:[#allocation5 + $0x8] sm:$0xff]  ;;  %v92_v54 = vshrl.u32 %v91_v53, 7 }
  0x37   :  { %131 = vmatprep.subr.mxu0 %v86_v3  ;;  %v193_v8 = vld [vmem:[#allocation7 + $0x78] sm:$0xff]  ;;  %v208_v9 = vld [vmem:[#allocation7 + $0xf0] sm:$0xff]  ;;  %413 = vmatprep.subr.mxu1 %v209_v7  ;;  %v81_v12 = vld [vmem:[#allocation5] sm:$0xff] }
  0x38   :  { %132 = vmatpush1.msra.mxu0 %v85_v4  ;;  %v192_v11 = vld [vmem:[#allocation7 + $0x70] sm:$0xff]  ;;  %414 = vmatpush3.msra.mxu1 %v193_v8  ;;  %v207_v13 = vld [vmem:[#allocation7 + $0xe8] sm:$0xff]  ;;  %v80_v14 = vld [vmem:[#allocation2] sm:$0xff]  ;;  %v93_v55 = vsub.s32 0, %v92_v54  ;;  %v97_v57 = vsub.s32 1, %v92_v54 }
  0x39   :  { %133 = vmatprep.subr.mxu0 %v84_v5  ;;  %415 = vmatprep.subr.mxu1 %v208_v9  ;;  %v191_v15 = vld [vmem:[#allocation7 + $0x68] sm:$0xff]  ;;  %v206_v16 = vld [vmem:[#allocation7 + $0xe0] sm:$0xff]  ;;  %v205_v18 = vld [vmem:[#allocation7 + $0xd8] sm:$0xff] }
  0x3a   :  { %134 = vmatpush1.msra.mxu0 %v83_v6  ;;  %416 = vmatpush3.msra.mxu1 %v192_v11  ;;  %v190_v17 = vld [vmem:[#allocation7 + $0x60] sm:$0xff]  ;;  %v189_v19 = vld [vmem:[#allocation7 + $0x58] sm:$0xff]  ;;  %v204_v20 = vld [vmem:[#allocation7 + $0xd0] sm:$0xff] }
  0x3b   :  { %135 = vmatprep.subr.mxu0 %v82_v10  ;;  %417 = vmatprep.subr.mxu1 %v207_v13  ;;  %v188_v21 = vld [vmem:[#allocation7 + $0x50] sm:$0xff]  ;;  %v203_v22 = vld [vmem:[#allocation7 + $0xc8] sm:$0xff]  ;;  %v202_v24 = vld [vmem:[#allocation7 + $0xc0] sm:$0xff] }
  0x3c   :  { %136 = vmatpush1.msra.mxu0 %v81_v12  ;;  %418 = vmatpush3.msra.mxu1 %v191_v15  ;;  %v187_v23 = vld [vmem:[#allocation7 + $0x48] sm:$0xff]  ;;  %v186_v25 = vld [vmem:[#allocation7 + $0x40] sm:$0xff]  ;;  %v201_v26 = vld [vmem:[#allocation7 + $0xb8] sm:$0xff] }
  0x3d   :  { %410 = vmatmul.mubr.msk.f32.vlgmr.msra.gmra.mxu0 %vm101_vm0, %v80_v14  ;;  %419 = vmatprep.subr.mxu1 %v206_v16  ;;  %v185_v27 = vld [vmem:[#allocation7 + $0x38] sm:$0xff]  ;;  %v200_v28 = vld [vmem:[#allocation7 + $0xb0] sm:$0xff]  ;;  %v199_v30 = vld [vmem:[#allocation7 + $0xa8] sm:$0xff] }
  0x3e   :  { %465 = vmatprep.subr.mxu0 %v631_v0  ;;  %420 = vmatpush3.msra.mxu1 %v190_v17  ;;  %v184_v29 = vld [vmem:[#allocation7 + $0x30] sm:$0xff]  ;;  %v183_v31 = vld [vmem:[#allocation7 + $0x28] sm:$0xff]  ;;  %v198_v32 = vld [vmem:[#allocation7 + $0xa0] sm:$0xff] }
  0x3f   :  { %421 = vmatprep.subr.mxu1 %v205_v18  ;;  %v182_v33 = vld [vmem:[#allocation7 + $0x20] sm:$0xff]  ;;  %v197_v34 = vld [vmem:[#allocation7 + $0x98] sm:$0xff]  ;;  %v196_v36 = vld [vmem:[#allocation7 + $0x90] sm:$0xff]  ;;  %497 = vmatprep.mubr.msk.f32.mxu0 %vm632_vm1, %v631_v0 }
  0x40   :  { %422 = vmatpush3.msra.mxu1 %v189_v19  ;;  %v181_v35 = vld [vmem:[#allocation7 + $0x18] sm:$0xff]  ;;  %v180_v37 = vld [vmem:[#allocation7 + $0x10] sm:$0xff]  ;;  %v195_v38 = vld [vmem:[#allocation7 + $0x88] sm:$0xff] }
  0x41   :  { %423 = vmatprep.subr.mxu1 %v204_v20  ;;  %v179_v39 = vld [vmem:[#allocation7 + $0x8] sm:$0xff]  ;;  %v194_v40 = vld [vmem:[#allocation7 + $0x80] sm:$0xff]  ;;  %v303_v42 = vld [vmem:[#allocation8 + $0x78] sm:$0xff] }
  0x42   :  { %424 = vmatpush3.msra.mxu1 %v188_v21  ;;  %v178_v41 = vld [vmem:[#allocation7] sm:$0xff]  ;;  %v302_v43 = vld [vmem:[#allocation8 + $0x70] sm:$0xff]  ;;  %466 = vmatpush3.msra.mxu0 %v303_v42  ;;  %v301_v44 = vld [vmem:[#allocation8 + $0x68] sm:$0xff] }
  0x43   :  { %425 = vmatprep.subr.mxu1 %v203_v22  ;;  %467 = vmatprep.subr.mxu0 %v631_v0  ;;  %v300_v45 = vld [vmem:[#allocation8 + $0x60] sm:$0xff]  ;;  %v299_v46 = vld [vmem:[#allocation8 + $0x58] sm:$0xff]  ;;  %v298_v47 = vld [vmem:[#allocation8 + $0x50] sm:$0xff] }
  0x44   :  { %426 = vmatpush3.msra.mxu1 %v187_v23  ;;  %468 = vmatpush3.msra.mxu0 %v302_v43  ;;  %v297_v48 = vld [vmem:[#allocation8 + $0x48] sm:$0xff]  ;;  %v296_v49 = vld [vmem:[#allocation8 + $0x40] sm:$0xff]  ;;  %v295_v50 = vld [vmem:[#allocation8 + $0x38] sm:$0xff] }
  0x45   :  { %427 = vmatprep.subr.mxu1 %v202_v24  ;;  %469 = vmatprep.subr.mxu0 %v631_v0  ;;  %v294_v51 = vld [vmem:[#allocation8 + $0x30] sm:$0xff]  ;;  %v293_v52 = vld [vmem:[#allocation8 + $0x28] sm:$0xff]  ;;  %v89_v56 = vld [vmem:[%s718_s2] sm:$0x3] }
  0x46   :  { %428 = vmatpush3.msra.mxu1 %v186_v25  ;;  %470 = vmatpush3.msra.mxu0 %v301_v44  ;;  %v94_v58 = vrot.slane %v89_v56, %v93_v55  ;;  %v98_v59 = vrot.slane %v89_v56, %v97_v57  ;;  %v292_v3 = vld [vmem:[#allocation8 + $0x20] sm:$0xff]  ;;  %v291_v4 = vld [vmem:[#allocation8 + $0x18] sm:$0xff]  ;;  %v290_v5 = vld [vmem:[#allocation8 + $0x10] sm:$0xff] }
  0x47   :  { %429 = vmatprep.subr.mxu1 %v201_v26  ;;  %471 = vmatprep.subr.mxu0 %v631_v0  ;;  %v289_v6 = vld [vmem:[#allocation8 + $0x8] sm:$0xff]  ;;  %v288_v7 = vld [vmem:[#allocation8] sm:$0xff]  ;;  %v411_v9 = vld [vmem:[%s720_s4] ss:$0 sm:$0xff]  ;;  %s633_s4 = smov [#allocation10]  }
  0x48   :  { %430 = vmatpush3.msra.mxu1 %v185_v27  ;;  %472 = vmatpush3.msra.mxu0 %v300_v45  ;;  %v412_v14 = vld [vmem:[%s722_s6] ss:$0 sm:$0xff]  ;;  %s399_s26 = sshll.u32 %s633_s4, 4  ;;  %s400_s26 = int_to_ptr.vmem [resolvable:$true] %s399_s26 }
  0x49   :  { %431 = vmatprep.subr.mxu1 %v200_v28  ;;  %473 = vmatprep.subr.mxu0 %v631_v0  ;;  %s595_s6 = scalar_lea.vmem %s400_s26, 128  ;;  %p600_p7 = scmp.lt.s32.totalorder %s400_s26, %s400_s26 }
  0x4a   :  { %432 = vmatpush3.msra.mxu1 %v184_v29  ;;  %474 = vmatpush3.msra.mxu0 %v299_v46  ;;  %p596_p6 = scmp.ne.s32.totalorder %s400_s26, %s595_s6  ;;  %p601_p8 = scmp.lt.s32.totalorder %s595_s6, %s595_s6 }
  0x4b   :  { %433 = vmatprep.subr.mxu1 %v199_v30  ;;  %475 = vmatprep.subr.mxu0 %v631_v0 }
  0x4c   :  { %434 = vmatpush3.msra.mxu1 %v183_v31  ;;  %476 = vmatpush3.msra.mxu0 %v298_v47  ;;  %p602_p9 = por %p601_p8, %p600_p7 }
  0x4d   :  { %435 = vmatprep.subr.mxu1 %v198_v32  ;;  %477 = vmatprep.subr.mxu0 %v631_v0 }
  0x4e   :  { %436 = vmatpush3.msra.mxu1 %v182_v33  ;;  %478 = vmatpush3.msra.mxu0 %v297_v48  ;;  %p603_p10 = pnand %p602_p9, %p596_p6 }
  0x4f   :  { %437 = vmatprep.subr.mxu1 %v197_v34  ;;  %479 = vmatprep.subr.mxu0 %v631_v0 }
  0x50   :  { %438 = vmatpush3.msra.mxu1 %v181_v35  ;;  %480 = vmatpush3.msra.mxu0 %v296_v49 }
  0x51   :  { %439 = vmatprep.subr.mxu1 %v196_v36  ;;  %481 = vmatprep.subr.mxu0 %v631_v0 }
  0x52   :  { %440 = vmatpush3.msra.mxu1 %v180_v37  ;;  %482 = vmatpush3.msra.mxu0 %v295_v50 }
  0x53   :  { %441 = vmatprep.subr.mxu1 %v195_v38  ;;  %483 = vmatprep.subr.mxu0 %v631_v0 }
  0x54   :  { %442 = vmatpush3.msra.mxu1 %v179_v39  ;;  %484 = vmatpush3.msra.mxu0 %v294_v51 }
  0x55   :  { %443 = vmatprep.subr.mxu1 %v194_v40  ;;  %485 = vmatprep.subr.mxu0 %v631_v0 }
  0x56   :  { %444 = vmatpush3.msra.mxu1 %v178_v41  ;;  %486 = vmatpush3.msra.mxu0 %v293_v52 }
  0x57   :  { %487 = vmatprep.subr.mxu0 %v631_v0 }
  0x58   :  { %488 = vmatpush3.msra.mxu0 %v292_v3 }
  0x59   :  { %489 = vmatprep.subr.mxu0 %v631_v0 }
  0x5a   :  { %490 = vmatpush3.msra.mxu0 %v291_v4 }
  0x5b   :  { %491 = vmatprep.subr.mxu0 %v631_v0 }
  0x5c   :  { %492 = vmatpush3.msra.mxu0 %v290_v5 }
  0x5d   :  { %493 = vmatprep.subr.mxu0 %v631_v0 }
  0x5e   :  { %494 = vmatpush3.msra.mxu0 %v289_v6 }
  0x5f   :  { %495 = vmatprep.subr.mxu0 %v631_v0 }
  0x60   :  { %496 = vmatpush3.msra.mxu0 %v288_v7 }
  0xfd   :  { %v171_v60 = vpop.f32.mrf.mxu0 }
  0xfe   :  { %v172_v61 = vadd.f32 %v171_v60, %v94_v58 }
  0xff   :  { %v173_v62 = vpop.f32.mrf.mxu0 }
 0x100   :  { %v174_v63 = vadd.f32 %v173_v62, %v98_v59  ;;  %v176_v2 = vmax.f32 %v172_v61, 0.0 }
 0x102   :  { %v177_v1 = vmax.f32 %v174_v63, 0.0 }
 0x104   :  { %281 = vmatprep.mubr.f32.mxu1 %v177_v1 }
 0x105   :  { %282 = vmatmul.mubr.f32.vlgmr.msra.gmra.mxu1 %v176_v2 }
 0x1c5   :  { %v445_v8 = vpop.f32.mrf.mxu1 }
 0x1c7   :  { %v446_v10 = vpop.f32.mrf.mxu1 }
 0x1c8   :  { %v447_v11 = vadd.f32 %v446_v10, %v445_v8 }
 0x1ca   :  { %v284_v12 = vadd.f32 %v447_v11, %v411_v9 }
 0x1cc   :  { %v287_v13 = vmax.f32 %v284_v12, 0.0 }
 0x1ce   :  { %498 = vmatmul.mubr.f32.vlgmr.msra.gmra.mxu0 %v287_v13 }
 0x28e   :  { %v377_v15 = vpop.f32.mrf.mxu0 }
 0x28f   :  { %v378_v16 = vadd.f32 %v412_v14, %v377_v15 }
 0x290   :  { %v499_v17 = vpop.f32.mrf.mxu0 }
 0x291   :  { %381 = vmax.xlane.f32.xlu0 %v378_v16 }
 0x31a   :  { %v382_v18 = vpop.xlane.xlu0 %381 }
 0x31b   :  { %v383_v0 = vsub.f32 %v378_v16, %v382_v18 }
 0x31d   :  { %v384_v19 = vmul.f32 1.442695, %v383_v0 }
 0x31f   :  { %511 = vpow2.f32 %v384_v19 }
 0x32c   :  { %v512_v20 = vpop.eup %511 }
 0x32d   :  { %386 = vadd.xlane.f32.xlu0 %v512_v20 }
 0x3b6   :  { %v387_v21 = vpop.xlane.xlu0 %386 }
 0x3b7   :  { %513 = vlog2.f32 %v387_v21 }
 0x3c4   :  { %v514_v22 = vpop.eup %513 }
 0x3c5   :  { %v389_v23 = vmul.f32 0.6931472, %v514_v22 }
 0x3c7   :  { %v390_v24 = vsub.f32 %v383_v0, %v389_v23 }
 0x3c9   :  { %392 = vst.msk [vmem:[#allocation10] sm:$0xff] %vm391_vm2, %v390_v24 }
 0x3ca   :  { %606 = shalt.err (!%p603_p10)
}
 0x3cb   :  { %402 = dma.vmem_to_hbm [thread:$0]  %s400_s26, 128, %s723_s7, [#allocation4]  }
 0x3cc   :  { %621 = dma.done.wait [#allocation4], 128  }
 0x3cd   :  { %622 = vsyncadd [#allocation4], 4294967168 }
 0x3ce   :  { %406 = vsyncpa [#allocation3], 1 }
 0x3cf   :  { %407 = vsyncpa [#allocation6], 1 }
 0x3d0   :  { %408 = vsyncpa [#allocation9], 1 }
 0x3d1   :  { %409 = vsyncpa [#allocation4], 1 }

</bundles_post_ra>
